<compile_context>
chip_gen: v5e
topology: v5e:2x2
jax: 0.10.0
libtpu: 0.0.40
codegen_flags: <defaults>
</compile_context>

<pallas_src>
import functools

import jax
import jax.numpy as jnp
from jax.experimental import pallas as pl
from jax.experimental.pallas import tpu as pltpu


def _layernorm_kernel(x_ref, w_ref, b_ref, o_ref, *, eps, true_hidden, padded):
    # x_ref: (tile_rows, hidden_p) ; w_ref / b_ref: (1, hidden_p)
    inv_h = 1.0 / float(true_hidden)
    x = x_ref[...].astype(jnp.float32)

    # Pass 1: mean. Padded lanes hold zeros, so sum(x) * (1/true_hidden) is
    # exact. Two-pass (centered) variance matches BertLayerNorm's
    # u = mean(x); s = mean((x - u)^2) with no E[x^2]-E[x]^2 cancellation and
    # the same per-element op count.
    mean = jnp.sum(x, axis=-1, keepdims=True) * inv_h
    xc = x - mean

    if padded:
        # Exclude zero-padded lanes (where xc == -mean) from the variance.
        lane = jax.lax.broadcasted_iota(jnp.int32, (1, xc.shape[-1]), 1)
        xc_v = jnp.where(lane < true_hidden, xc, 0.0)
    else:
        xc_v = xc
    var = jnp.sum(xc_v * xc_v, axis=-1, keepdims=True) * inv_h
    inv = jax.lax.rsqrt(var + eps)  # EUP slot, effectively free

    # Affine params cast once per block (hoisted, not per-element).
    w = w_ref[...].astype(jnp.float32)
    b = b_ref[...].astype(jnp.float32)

    # NOTE: rows past the true row count in the ragged final block produce
    # garbage that is masked on writeback; this is safe ONLY because rows are
    # fully independent here (no cross-row reduction).
    o_ref[...] = ((xc * inv) * w + b).astype(o_ref.dtype)


def _vmem_cap_budget():
    """Generation-aware VMEM budget for vmem_limit_bytes (leave ~25% headroom)."""
    try:
        cap = int(pltpu.get_tpu_info().vmem_capacity_bytes)
    except Exception:
        cap = 64 << 20  # assume the smallest (v7x) if the query is unavailable
    return (cap // 4) * 3  # ~48 MiB on v7x, ~96 MiB on v5e/v6e


def _pick_tile_rows(rows, hidden_p, in_itemsize, out_itemsize, cap_budget,
                    requested=None):
    """Row tile: largest dtype-aligned tile within the per-step budget and the
    physical-VMEM cap, while keeping >= ~4 grid steps for pipelining / v7x's
    two TensorCores."""
    # dtype-aware sublane alignment: 8 rows/vreg for 4B, 16 for 2B, 32 for 1B.
    sublane = max(8, 32 // max(in_itemsize, 1))
    # Resident bytes per row: double-buffered in+out blocks + ~2 f32 working
    # blocks held live inside the kernel body.
    bytes_per_row = hidden_p * (2 * (in_itemsize + out_itemsize) + 8)
    max_tr_cap = max(sublane, (cap_budget - (8 << 20)) // bytes_per_row)

    if requested is None:
        budget = 32 * 1024 * 1024  # ~16-32 MiB of pipelined blocks per step
        tr = budget // max(bytes_per_row, 1)
        # Keep the grid at >= ~4 steps: overlaps the DMA pipeline and lets
        # v7x's 2 TCs both take work on the "parallel" axis (no-op on 1-TC
        # v5e/v6e).
        rows_per_step = -(-rows // 4)
        rows_per_step = -(-rows_per_step // sublane) * sublane
        tr = min(tr, rows_per_step)
    else:
        tr = requested

    tr = min(tr, max_tr_cap)                    # never exceed physical VMEM
    rows_al = -(-rows // sublane) * sublane
    tr = min(tr, rows_al)
    tr = max(sublane, (tr // sublane) * sublane)
    return int(tr)


def layer_norm(x, weight, bias, eps=1e-12, tile_rows=None):
    """TF-style LayerNorm over the last axis. x: (..., hidden). Same shape/dtype out."""
    orig_shape = x.shape
    hidden = orig_shape[-1]
    rows = 1
    for d in orig_shape[:-1]:
        rows *= d
    out_dtype = x.dtype

    x2 = x.reshape(rows, hidden)
    w2 = weight.reshape(1, hidden)
    b2 = bias.reshape(1, hidden)

    # Lane-dense fast path requires hidden % 128 == 0 (unmasked vst); other
    # sizes are zero-padded (padded lanes are masked out of the variance and
    # sliced off the output).
    # TODO(synk): for small hidden, fold rows into the lane axis instead of
    # padding to avoid the extra HBM pass.
    hidden_p = -(-hidden // 128) * 128
    padded = hidden_p != hidden
    if padded:
        pw = hidden_p - hidden
        x2 = jnp.pad(x2, ((0, 0), (0, pw)))
        w2 = jnp.pad(w2, ((0, 0), (0, pw)))
        b2 = jnp.pad(b2, ((0, 0), (0, pw)))

    in_bytes = jnp.dtype(x2.dtype).itemsize
    out_bytes = jnp.dtype(out_dtype).itemsize

    cap_budget = _vmem_cap_budget()
    tr = _pick_tile_rows(rows, hidden_p, in_bytes, out_bytes, cap_budget, tile_rows)
    grid = (pl.cdiv(rows, tr),)

    # Explicit VMEM budget: double-buffered in+out blocks, f32 working blocks,
    # params + headroom; never above the physical-VMEM-derived cap.
    needed = tr * hidden_p * (2 * (in_bytes + out_bytes) + 8) + (8 << 20)
    vmem_limit = int(min(cap_budget, max(16 << 20, needed)))

    cost = pl.CostEstimate(
        flops=7 * rows * hidden_p,
        transcendentals=rows,
        bytes_accessed=rows * hidden_p * (in_bytes + out_bytes)
        + 2 * hidden_p * jnp.dtype(w2.dtype).itemsize,
    )

    kernel = functools.partial(
        _layernorm_kernel, eps=float(eps), true_hidden=int(hidden), padded=padded
    )

    out = pl.pallas_call(
        kernel,
        out_shape=jax.ShapeDtypeStruct((rows, hidden_p), out_dtype),
        grid_spec=pltpu.PrefetchScalarGridSpec(
            num_scalar_prefetch=0,
            grid=grid,
            in_specs=[
                pl.BlockSpec((tr, hidden_p), lambda i: (i, 0)),
                pl.BlockSpec((1, hidden_p), lambda i: (0, 0)),
                pl.BlockSpec((1, hidden_p), lambda i: (0, 0)),
            ],
            out_specs=pl.BlockSpec((tr, hidden_p), lambda i: (i, 0)),
        ),
        compiler_params=pltpu.CompilerParams(
            dimension_semantics=("parallel",),
            vmem_limit_bytes=vmem_limit,
        ),
        cost_estimate=cost,
    )(x2, w2, b2)

    if padded:
        out = out[:, :hidden]
    return out.reshape(orig_shape)


def _layer_norm_ref(x, weight, bias, eps=1e-12):
    xf = x.astype(jnp.float32)
    u = jnp.mean(xf, axis=-1, keepdims=True)
    s = jnp.mean((xf - u) ** 2, axis=-1, keepdims=True)
    xn = (xf - u) / jnp.sqrt(s + eps)
    return (weight.astype(jnp.float32) * xn + bias.astype(jnp.float32)).astype(x.dtype)


if __name__ == "__main__":
    key = jax.random.PRNGKey(0)
    hidden = 32

    # Parameter init matching nn.Parameter(torch.ones/zeros(hidden_size)).
    weight = jnp.ones((hidden,), dtype=jnp.float32)
    bias = jnp.zeros((hidden,), dtype=jnp.float32)

    k1, k2, k3, k4, kw, kb = jax.random.split(key, 6)

    # 1) module-consistent small shape: batch=2, seq=8, hidden=32 (padded lane path)
    x1 = jax.random.normal(k1, (2, 8, hidden), dtype=jnp.float32)
    o1 = jax.block_until_ready(layer_norm(x1, weight, bias, eps=1e-12))
    assert o1.shape == x1.shape and o1.dtype == x1.dtype
    assert jnp.allclose(o1, _layer_norm_ref(x1, weight, bias), atol=1e-4, rtol=1e-4)

    # 2) ragged row count (rows % tile_rows != 0) -> partial last block
    x2 = jax.random.normal(k2, (3, 5, hidden), dtype=jnp.float32)
    o2 = jax.block_until_ready(layer_norm(x2, weight, bias, eps=1e-12))
    assert o2.shape == x2.shape
    assert jnp.allclose(o2, _layer_norm_ref(x2, weight, bias), atol=1e-4, rtol=1e-4)

    # 3) multi-block grid path with ragged tail + non-trivial affine params
    w3 = jax.random.normal(kw, (hidden,), dtype=jnp.float32)
    b3 = jax.random.normal(kb, (hidden,), dtype=jnp.float32)
    x3 = jax.random.normal(k3, (2, 21, hidden), dtype=jnp.float32)
    o3 = jax.block_until_ready(layer_norm(x3, w3, b3, eps=1e-12, tile_rows=16))
    assert o3.shape == x3.shape
    assert jnp.allclose(o3, _layer_norm_ref(x3, w3, b3), atol=1e-4, rtol=1e-4)

    # 4) lane-dense fast path (hidden % 128 == 0) with bf16 I/O
    h4 = 128
    w4 = jax.random.normal(kw, (h4,), dtype=jnp.float32)
    b4 = jax.random.normal(kb, (h4,), dtype=jnp.float32)
    x4 = jax.random.normal(k4, (2, 16, h4), dtype=jnp.float32).astype(jnp.bfloat16)
    o4 = jax.block_until_ready(layer_norm(x4, w4, b4, eps=1e-12))
    assert o4.shape == x4.shape and o4.dtype == jnp.bfloat16
    assert jnp.allclose(
        o4.astype(jnp.float32),
        _layer_norm_ref(x4, w4, b4).astype(jnp.float32),
        atol=5e-2, rtol=5e-2,
    )

    print("KERNEL_OK")
</pallas_src>

<mosaic_0001>
module attributes {stable_mosaic.version = 11 : i64} {
  func.func @_layernorm_kernel(%arg0: i32, %arg1: memref<8x128xf32, #tpu.memory_space<vmem>>, %arg2: memref<1x128xf32, #tpu.memory_space<vmem>>, %arg3: memref<1x128xf32, #tpu.memory_space<vmem>>, %arg4: memref<8x128xf32, #tpu.memory_space<vmem>>) attributes {dimension_semantics = [#tpu.dimension_semantics<parallel>], iteration_bounds = array<i64: 2>, scalar_prefetch = 0 : i64, scratch_operands = 0 : i64, tpu.core_type = #tpu.core_type<tc>, window_params = [{transform_indices = @transform_0, window_bounds = array<i64: 8, 128>}, {pipeline_mode = #tpu.pipeline_mode<synchronous>, transform_indices = @transform_1, window_bounds = array<i64: 1, 128>}, {pipeline_mode = #tpu.pipeline_mode<synchronous>, transform_indices = @transform_2, window_bounds = array<i64: 1, 128>}, {transform_indices = @transform_3, window_bounds = array<i64: 8, 128>}]} {
    %c0 = arith.constant 0 : index
    %c0_0 = arith.constant 0 : index
    %0 = vector.load %arg1[%c0, %c0_0] : memref<8x128xf32, #tpu.memory_space<vmem>>, vector<8x128xf32>
    %cst = arith.constant dense<0.000000e+00> : vector<8xf32>
    %1 = vector.multi_reduction <add>, %0, %cst [1] : vector<8x128xf32> to vector<8xf32>
    %2 = vector.shape_cast %1 : vector<8xf32> to vector<8x1xf32>
    %cst_1 = arith.constant 3.125000e-02 : f32
    %3 = vector.broadcast %cst_1 : f32 to vector<8x1xf32>
    %4 = arith.mulf %2, %3 : vector<8x1xf32>
    %5 = vector.broadcast %4 : vector<8x1xf32> to vector<8x128xf32>
    %6 = arith.subf %0, %5 : vector<8x128xf32>
    %7 = tpu.iota {dimensions = array<i32: 1>} : vector<1x128xi32>
    %c32_i32 = arith.constant 32 : i32
    %8 = vector.broadcast %c32_i32 : i32 to vector<1x128xi32>
    %9 = arith.cmpi slt, %7, %8 : vector<1x128xi32>
    %cst_2 = arith.constant 0.000000e+00 : f32
    %10 = vector.shape_cast %9 : vector<1x128xi1> to vector<1x128xi1>
    %11 = vector.broadcast %10 : vector<1x128xi1> to vector<8x128xi1>
    %12 = vector.broadcast %cst_2 : f32 to vector<8x128xf32>
    %13 = arith.select %11, %6, %12 : vector<8x128xi1>, vector<8x128xf32>
    %14 = arith.mulf %13, %13 : vector<8x128xf32>
    %cst_3 = arith.constant dense<0.000000e+00> : vector<8xf32>
    %15 = vector.multi_reduction <add>, %14, %cst_3 [1] : vector<8x128xf32> to vector<8xf32>
    %16 = vector.shape_cast %15 : vector<8xf32> to vector<8x1xf32>
    %cst_4 = arith.constant 3.125000e-02 : f32
    %17 = vector.broadcast %cst_4 : f32 to vector<8x1xf32>
    %18 = arith.mulf %16, %17 : vector<8x1xf32>
    %cst_5 = arith.constant 9.99999996E-13 : f32
    %19 = vector.broadcast %cst_5 : f32 to vector<8x1xf32>
    %20 = arith.addf %18, %19 : vector<8x1xf32>
    %21 = math.rsqrt %20 : vector<8x1xf32>
    %c0_6 = arith.constant 0 : index
    %c0_7 = arith.constant 0 : index
    %22 = vector.load %arg2[%c0_6, %c0_7] : memref<1x128xf32, #tpu.memory_space<vmem>>, vector<1x128xf32>
    %c0_8 = arith.constant 0 : index
    %c0_9 = arith.constant 0 : index
    %23 = vector.load %arg3[%c0_8, %c0_9] : memref<1x128xf32, #tpu.memory_space<vmem>>, vector<1x128xf32>
    %24 = vector.broadcast %21 : vector<8x1xf32> to vector<8x128xf32>
    %25 = arith.mulf %6, %24 : vector<8x128xf32>
    %26 = vector.broadcast %22 : vector<1x128xf32> to vector<8x128xf32>
    %27 = arith.mulf %25, %26 : vector<8x128xf32>
    %28 = vector.broadcast %23 : vector<1x128xf32> to vector<8x128xf32>
    %29 = arith.addf %27, %28 : vector<8x128xf32>
    %c0_10 = arith.constant 0 : index
    %c0_11 = arith.constant 0 : index
    %30 = vector.load %arg4[%c0_10, %c0_11] : memref<8x128xf32, #tpu.memory_space<vmem>>, vector<8x128xf32>
    tpu.vector_store %arg4[%c0_10, %c0_11], %29 {strides = array<i32>} : memref<8x128xf32, #tpu.memory_space<vmem>>, vector<8x128xf32>,
    return
  }
  func.func @transform_0(%arg0: i32) -> (i32, i32) {
    %c0_i32 = arith.constant 0 : i32
    %c0_i32_0 = arith.constant 0 : i32
    return %arg0, %c0_i32 : i32, i32
  }
  func.func @transform_1(%arg0: i32) -> (i32, i32) {
    %c0_i32 = arith.constant 0 : i32
    %c0_i32_0 = arith.constant 0 : i32
    %c0_i32_1 = arith.constant 0 : i32
    return %c0_i32, %c0_i32_0 : i32, i32
  }
  func.func @transform_2(%arg0: i32) -> (i32, i32) {
    %c0_i32 = arith.constant 0 : i32
    %c0_i32_0 = arith.constant 0 : i32
    %c0_i32_1 = arith.constant 0 : i32
    return %c0_i32, %c0_i32_0 : i32, i32
  }
  func.func @transform_3(%arg0: i32) -> (i32, i32) {
    %c0_i32 = arith.constant 0 : i32
    %c0_i32_0 = arith.constant 0 : i32
    return %arg0, %c0_i32 : i32, i32
  }
}

</mosaic_0001>

<bundles_post_ra>
// kernel: tpu_custom_call.1
= control target key start
LH: loop header
LB: loop body
LE: loop exit
PB: predicated region body
PF: predicated region fallthrough
CT: control target
= control target key end

     0   :  { %8 = vsyncpa [#allocation3], 0  ;;  %s710_s0 = inlined_call_operand.hbm [shape: f32[16,128], index: 0, kind: input, shape index: {}]   ;;  %s711_s1 = inlined_call_operand.hbm [shape: f32[1,128], index: 1, kind: input, shape index: {}]   ;;  %s712_s2 = inlined_call_operand.vmem [shape: f32[1,128], index: 2, kind: input, shape index: {}]   ;;  %s713_s3 = inlined_call_operand.hbm [shape: f32[16,128], index: 3, kind: output, shape index: {}]  }
   0x1   :  { %10 = vsyncpa [#allocation3 + $0x1], 0 }
   0x2   :  { %11 = vsyncpa [#allocation6], 0 }
   0x3   :  { %12 = vsyncpa [#allocation4], 0 }
   0x4   :  { %14 = vsyncpa [#allocation4 + $0x1], 0  ;;  %s565_s12 = smov 0   ;;  %s567_s13 = smov 0  }
   0x5   :  { %s569_s14 = smov 0   ;;  %s571_s15 = smov 0  }
   0x6 LB: > { %s586_s16 = sadd.s32 4294967295, %s542_s15   ;;  %s337_s17 = sadd.s32 4294967294, %s542_s15   ;;  %s542_s15 = sphi %s571_s15, %s723_s15   ;;  %s538_s14 = sphi %s569_s14, %s722_s14   ;;  %s534_s13 = sphi %s567_s13, %s721_s13   ;;  %s530_s12 = sphi %s565_s12, %s720_s12  }
   0x7   : > { %p40_p0 = scmp.ne.s32.totalorder %s534_s13, %s530_s12  ;;  %p41_p1 = scmp.eq.s32.totalorder %s586_s16, 0 }
   0x8   : > { %p106_p2 = scmp.eq.s32.totalorder %s586_s16, 1  ;;  %p112_p3 = scmp.eq.s32.totalorder %s337_s17, 1 }
   0x9   : > { %p595_p4 = por %p41_p1, %p40_p0  ;;  %p338_p5 = scmp.ge.s32.totalorder %s542_s15, 1 }
   0xa   : > { %p600_p6 = por %p112_p3, %p40_p0  ;;  %p119_p7 = scmp.lt.s32.totalorder %s542_s15, 3 }
   0xb   : > { %s131_s22 = sshll.u32 %s711_s1, 4  ;;  %s544_s24 = smov [#allocation5]   ;;  %s132_s22 = int_to_ptr.hbm [resolvable:$true] %s131_s22 }
   0xc   : > { %p608_p8 = pnand %p338_p5, %p119_p7  ;;  %s133_s25 = sshll.u32 %s544_s24, 4  ;;  %s134_s25 = int_to_ptr.vmem [resolvable:$true] %s133_s25 }
   0xd   : > { %s618_s26 = sadd.s32 1, %s542_s15   ;;  %s27_s27 = sadd.s32 1, %s538_s14 }
   0xe   : > { %p359_p10 = pneg %p608_p8  ;;  %s24_s28 = ssub.s32 %s542_s15, %s618_s26 }
   0xf   : > { %p25_p12 = scmp.eq.s32.totalorder %s24_s28, 0  ;;  %p34_p13 = scmp.ne.s32.totalorder %s538_s14, %s534_s13 }
  0x10   : > { %p360_p11 = pnand %p359_p10, %p41_p1  ;;  %p35_p0 = scmp.eq.s32.totalorder %s542_s15, 0 }
  0x11   : > { %s627_s29 = scalar_select %p25_p12, %s538_s14, %s27_s27  }
  0x12   : > { %362 = dma.hbm_to_vmem [thread:$0]  (!%p360_p11), %s132_s22, 16, %s134_s25, [#allocation6]  }
  0x13   : > { %p631_p3 = por %p106_p2, %p34_p13  ;;  %p372_p5 = scmp.lt.s32.totalorder %s542_s15, 2 }
  0x14   : > { %s147_s4 = sand.u32 1, %s538_s14   ;;  %s342_s5 = sshll.u32 %s542_s15, 3 }
  0x15   : > { %p36_p7 = por %p35_p0, %p34_p13  ;;  %s341_s6 = sshll.u32 %s147_s4, 3 }
  0x16   : > { %s155_s9 = scalar_lea.hbm %s710_s0, %s342_s5  ;;  %s151_s11 = scalar_lea.vmem [#allocation2], %s341_s6 }
  0x17   : > { %s157_s10 = sshll.u32 %s155_s9, 4  ;;  %s159_s17 = sshll.u32 %s151_s11, 4  ;;  %s158_s10 = int_to_ptr.hbm [resolvable:$true] %s157_s10  ;;  %s160_s17 = int_to_ptr.vmem [resolvable:$true] %s159_s17 }
  0x18   : > { %p641_p10 = pnand %p372_p5, %p36_p7  ;;  %s148_s21 = scalar_lea.sflag [#allocation3], %s147_s4 }
  0x19   : > { %s442_s22 = sshra.s32 %s158_s10, 4  ;;  %s449_s28 = scalar_lea.hbm %s710_s0, 16  ;;  %s443_s22 = int_to_ptr.hbm [resolvable:$true] %s442_s22 }
  0x1a   : > { %s444_s24 = scalar_lea.hbm %s443_s22, 8  ;;  %p446_p11 = pneg %p641_p10 }
  0x1b   : > { %p445_p2 = scmp.ne.s32.totalorder %s443_s22, %s444_s24  ;;  %p450_p0 = scmp.lt.s32.totalorder %s443_s22, %s710_s0 }
  0x1c   : > { %p451_p5 = scmp.lt.s32.totalorder %s449_s28, %s444_s24 }
  0x1d   : > { %p447_p12 = pnand %p446_p11, %p445_p2 }
  0x1e   : > { %p452_p7 = por %p451_p5, %p450_p0 }
  0x1f   : > { %p448_p13 = pneg %p447_p12 }
  0x21   : > { %p453_p9 = pnand %p452_p7, %p448_p13 }
  0x23   : > { %456 = shalt.err (!%p453_p9)
}
  0x24   : > { %366 = dma.hbm_to_vmem [thread:$0]  (!%p641_p10), %s158_s10, 128, %s160_s17, %s148_s21  }
  0x25   : > { %168 = sbr.rel (%p608_p8) target bundleno = 316 (0x13c), region = 32  ;;  %s658_s4 = sand.u32 (!%p608_p8), 1, %s534_s13  }
  0x26   : > { %s344_s7 = sshll.u32 (!%p608_p8), %s658_s4, 3  ;;  %s171_s8 = scalar_lea.sflag (!%p608_p8), [#allocation3], %s658_s4 }
  0x27   : > { %s174_s9 = scalar_lea.vmem (!%p608_p8), [#allocation2], %s344_s7 }
  0x2a   : > { %517 = dma.done.wait (%p595_p4), %s171_s8, 128  }
  0x2b   : > { %519 = vsyncadd (%p595_p4), %s171_s8, 4294967168 }
  0x2c   : > { %521 = dma.done.wait (%p41_p1), [#allocation6], 16  }
  0x2d   : > { %523 = vsyncadd (%p41_p1), [#allocation6], 4294967280  ;;  %v203_v0 = vld [vmem:[%s174_s9] sm:$0xff]  ;;  %v208_v1 = vlaneseq  ;;  %s348_s18 = sshll.u32 %s586_s16, 3  ;;  %v408_v17 = vld [vmem:[#allocation5] ss:$0 sm:$0xff] }
  0x2e   : > { %204 = vadd.xlane.f32.xlu0 %v203_v0  ;;  %s252_s11 = scalar_lea.hbm %s713_s3, %s348_s18  ;;  %v409_v20 = vld [vmem:[%s712_s2] ss:$0 sm:$0xff]  ;;  %s202_s21 = scalar_lea.vmem [#allocation7], %s344_s7 }
  0x2f   : > { %v209_v2 = vand.u32 127, %v208_v1  ;;  %s254_s22 = sshll.u32 %s202_s21, 4  ;;  %s256_s16 = sshll.u32 %s252_s11, 4  ;;  %s255_s22 = int_to_ptr.vmem [resolvable:$true] %s254_s22  ;;  %s257_s16 = int_to_ptr.hbm [resolvable:$true] %s256_s16 }
  0x30   : > { %s242_s24 = scalar_lea.sflag [#allocation4], %s658_s4  ;;  %s486_s25 = sshra.s32 %s257_s16, 4  ;;  %s487_s25 = int_to_ptr.hbm [resolvable:$true] %s486_s25 }
  0x31   : > { %vm210_vm0 = vcmp.lt.s32.totalorder %v209_v2, 32  ;;  %s488_s27 = scalar_lea.hbm %s487_s25, 8  ;;  %s492_s6 = scalar_lea.hbm %s713_s3, 16 }
  0x32   : > { %p489_p1 = scmp.ne.s32.totalorder %s487_s25, %s488_s27  ;;  %p493_p9 = scmp.lt.s32.totalorder %s487_s25, %s713_s3 }
  0x33   : > { %p494_p10 = scmp.lt.s32.totalorder %s492_s6, %s488_s27 }
  0x34   : > { %p490_p4 = pnand %p489_p1, %p631_p3 }
  0x35   : > { %p495_p2 = por %p494_p10, %p493_p9 }
  0x36   : > { %p491_p8 = pneg %p490_p4 }
  0x38   : > { %p496_p11 = pnand %p495_p2, %p491_p8 }
  0xa1   : > { %v205_v3 = vpop.xlane.xlu0 %204 }
  0xa2   : > { %v206_v4 = vmul.f32 0.03125, %v205_v3 }
  0xa4   : > { %v207_v5 = vsub.f32 %v203_v0, %v206_v4 }
  0xa6   : > { %v213_v6 = vsel %vm210_vm0, %v207_v5, 0.0 }
  0xa7   : > { %v214_v7 = vmul.f32 %v213_v6, %v213_v6 }
  0xa9   : > { %215 = vadd.xlane.f32.xlu0 %v214_v7 }
 0x11c   : > { %v216_v8 = vpop.xlane.xlu0 %215 }
 0x11d   : > { %v217_v9 = vmul.f32 0.03125, %v216_v8 }
 0x11f   : > { %v218_v10 = vadd.f32 1e-12, %v217_v9 }
 0x121   : > { %410 = vrsqrt.f32 %v218_v10  ;;  %vm225_vm2 = vweird.f32 %v218_v10 }
 0x127   : > { %v411_v11 = vpop.eup %410 }
 0x128   : > { %v220_v12 = vmul.f32 %v411_v11, %v218_v10  ;;  %vm226_vm1 = vweird.f32 %v411_v11 }
 0x129   : > { %vm227_vm3 = vmor %vm225_vm2, %vm226_vm1 }
 0x12a   : > { %v221_v13 = vmul.f32 %v411_v11, %v220_v12 }
 0x12c   : > { %v222_v14 = vmul.f32 0.5, %v221_v13 }
 0x12e   : > { %v223_v15 = vsub.f32 1.5, %v222_v14 }
 0x130   : > { %v224_v16 = vmul.f32 %v411_v11, %v223_v15 }
 0x132   : > { %v228_v18 = vsel %vm227_vm3, %v411_v11, %v224_v16 }
 0x133   : > { %v231_v19 = vmul.f32 %v228_v18, %v207_v5 }
 0x135   : > { %v235_v21 = vmul.f32 %v408_v17, %v231_v19 }
 0x137   : > { %v239_v22 = vadd.f32 %v409_v20, %v235_v21 }
 0x139   : > { %240 = vst [vmem:[%s202_s21] sm:$0xff] %v239_v22 }
 0x13a   : > { %499 = shalt.err (!%p496_p11)
}
 0x13b   : > { %357 = dma.vmem_to_hbm [thread:$0]  (%p631_p3), %s255_s22, 128, %s257_s16, %s242_s24  }
 0x13c PF: > { %s268_s4 = sand.u32 1, %s530_s12   ;;  %p719_p12 = scmp.ge.s32.totalorder %s542_s15, 2 }
 0x13d   : > { %s269_s9 = scalar_lea.sflag [#allocation4], %s268_s4 }
 0x13e   : > { %p368_p13 = pnand %p719_p12, %p600_p6 }
 0x140   : > { %p369_p0 = pneg %p368_p13 }
 0x142   : > { %525 = dma.done.wait (%p369_p0), %s269_s9, 128  }
 0x143   : > { %527 = vsyncadd (%p369_p0), %s269_s9, 4294967168  ;;  %p17_p5 = scmp.ge.s32.totalorder %s618_s26, 4   ;;  %s720_s12 = smov %s534_s13 }
 0x144   : > { %s721_s13 = smov %s538_s14  ;;  %s722_s14 = smov %s627_s29 }
 0x145   : > { %s723_s15 = smov %s618_s26  ;;  %19 = sbr.rel (!%p17_p5) target bundleno = 6 (0x6), region = 81 }
 0x14a   :  { %275 = vsyncpa [#allocation3], 1 }
 0x14b   :  { %277 = vsyncpa [#allocation3 + $0x1], 1 }
 0x14c   :  { %278 = vsyncpa [#allocation6], 1 }
 0x14d   :  { %279 = vsyncpa [#allocation4], 1 }
 0x14e   :  { %281 = vsyncpa [#allocation4 + $0x1], 1 }

</bundles_post_ra>
